<compile_context>
chip_gen: v7x
topology: tpu7x:2x2x1
jax: 0.10.0
libtpu: 0.0.40
codegen_flags: <defaults>
</compile_context>

<pallas_src>
import jax
import jax.numpy as jnp
from jax.experimental import pallas as pl
from jax.experimental.pallas import tpu as pltpu

_LANE = 128                     # TPU vreg lane width
_K_FULL_MAX = 2048              # keep whole contraction as one VMEM tile up to here
_N_FULL_MAX = 1024              # keep all output lanes as one tile up to here
_TK = 512                       # K tile when D_in is large
_TN = 512                       # N tile when D_out is large
_VMEM_TILE_BUDGET = 40 * 1024 * 1024   # per-step tile footprint target (v7x-safe)


def _round_up(x, m):
    return ((x + m - 1) // m) * m


def _sublane(dtype):
    # sublane packing: 8 rows for 4-byte, 16 for 2-byte, 32 for 1-byte dtypes
    return {4: 8, 2: 16, 1: 32}.get(jnp.dtype(dtype).itemsize, 8)


# ----------------------------------------------------------------------------
# Kernels
# ----------------------------------------------------------------------------
def _linear_relu_kernel(x_ref, w_ref, b_ref, o_ref):
    """Single-K-tile path: o = relu(x @ W + b), lane-dense stores."""
    y = jnp.dot(x_ref[...], w_ref[...], preferred_element_type=jnp.float32)
    o_ref[...] = jnp.maximum(y + b_ref[...], 0.0).astype(o_ref.dtype)


def _linear_relu_acc_kernel(x_ref, w_ref, b_ref, o_ref, acc_ref):
    """K-tiled path: accumulate into f32 scratch, bias+relu on last K step."""
    k = pl.program_id(2)

    @pl.when(k == 0)
    def _():
        acc_ref[...] = jnp.zeros_like(acc_ref)

    acc_ref[...] += jnp.dot(x_ref[...], w_ref[...],
                            preferred_element_type=jnp.float32)

    @pl.when(k == pl.num_programs(2) - 1)
    def _():
        o_ref[...] = jnp.maximum(acc_ref[...] + b_ref[...],
                                 0.0).astype(o_ref.dtype)


# ----------------------------------------------------------------------------
# One-time setup (off the hot path): pad inner-model parameters once.
# ----------------------------------------------------------------------------
def prepare_inner_model(weight, bias):
    """Pad weight/bias to lane/tile-aligned shapes ONCE (module init time).

    weight: (D_in, D_out), bias: (1, D_out)
    returns (weight_p, bias_p, D_in, D_out)
    """
    D_in, D_out = weight.shape
    D_out_p = _round_up(D_out, _LANE)
    if D_in <= _K_FULL_MAX:
        D_in_p = D_in                      # single K tile: block == full dim, no pad
    else:
        D_in_p = _round_up(D_in, _TK)      # K tiles must divide exactly (reduction dim)
    w_p = weight
    b_p = bias.reshape(1, -1)
    if (D_in_p, D_out_p) != (D_in, D_out):
        w_p = jnp.pad(weight, ((0, D_in_p - D_in), (0, D_out_p - D_out)))
    if D_out_p != D_out:
        b_p = jnp.pad(b_p, ((0, 0), (0, D_out_p - D_out)))
    return w_p, b_p, D_in, D_out


# ----------------------------------------------------------------------------
# Fused relu(x @ W + b) over a flattened (M, D_in) input.
# ----------------------------------------------------------------------------
def _fused_linear_relu_2d(x2d, weight_p, bias_p, *, tile_m=1024):
    M, K = x2d.shape
    K_p, D_out_p = weight_p.shape
    dtype = x2d.dtype
    itemsize = jnp.dtype(dtype).itemsize
    sub = _sublane(dtype)

    # Pad the contraction dim of x only when K tiling forces it (large D_in).
    if K_p != K:
        x2d = jnp.pad(x2d, ((0, 0), (0, K_p - K)))

    tk = K_p if K_p <= _K_FULL_MAX else _TK
    tn = D_out_p if D_out_p <= _N_FULL_MAX else _TN
    grid_k = pl.cdiv(K_p, tk)
    grid_n = pl.cdiv(D_out_p, tn)
    resident_w = (grid_k == 1 and grid_n == 1)

    # Row tile: largest (sublane-aligned) tile up to tile_m that fits the budget.
    tm = M if M <= tile_m else _round_up(tile_m, sub)

    def footprint(tm_):
        w_bufs = 1 if resident_w else 2
        return (2 * tm_ * tk * itemsize                 # x (double-buffered)
                + w_bufs * tk * tn * itemsize           # weight
                + w_bufs * 8 * tn * itemsize            # bias (sublane-padded)
                + 2 * tm_ * tn * itemsize               # output (double-buffered)
                + (0 if grid_k == 1 else tm_ * tn * 4)) # f32 accumulator

    while footprint(tm) > _VMEM_TILE_BUDGET and tm > sub:
        tm = max(_round_up(tm // 2, sub), sub)

    grid_m = pl.cdiv(M, tm)
    # Megacore (v7x): keep the parallel row axis even so the two TCs get
    # balanced halves; harmless on single-TC chips.
    if grid_m > 1 and grid_m % 2 == 1:
        tm = max(_round_up(pl.cdiv(M, grid_m + 1), sub), sub)
        grid_m = pl.cdiv(M, tm)

    # Resident weight/bias: single VMEM buffer (constant index_map -> no re-DMA).
    wb_kwargs = dict(pipeline_mode=pl.Buffered(1)) if resident_w else {}
    in_specs = [
        pl.BlockSpec((tm, tk), lambda i, j, k: (i, k)),               # x row tile
        pl.BlockSpec((tk, tn), lambda i, j, k: (k, j), **wb_kwargs),  # weight
        pl.BlockSpec((1, tn), lambda i, j, k: (0, j), **wb_kwargs),   # bias
    ]
    out_spec = pl.BlockSpec((tm, tn), lambda i, j, k: (i, j))

    if grid_k == 1:
        kernel = _linear_relu_kernel
        scratch_shapes = ()
    else:
        kernel = _linear_relu_acc_kernel
        scratch_shapes = (pltpu.VMEM((tm, tn), jnp.float32),)

    fp = footprint(tm)
    vmem_limit = None
    if fp > 24 * 1024 * 1024:
        vmem_limit = int(min(fp + (8 << 20), 48 << 20))

    cost = pl.CostEstimate(
        flops=2 * M * K_p * D_out_p,
        transcendentals=0,
        bytes_accessed=itemsize * (M * K_p + K_p * D_out_p + D_out_p + M * D_out_p),
    )

    out2d = pl.pallas_call(
        kernel,
        out_shape=jax.ShapeDtypeStruct((M, D_out_p), dtype),
        grid_spec=pltpu.PrefetchScalarGridSpec(
            num_scalar_prefetch=0,
            grid=(grid_m, grid_n, grid_k),
            in_specs=in_specs,
            out_specs=out_spec,
            scratch_shapes=scratch_shapes,
        ),
        compiler_params=pltpu.CompilerParams(
            dimension_semantics=("parallel", "parallel", "arbitrary"),
            vmem_limit_bytes=vmem_limit,
        ),
        cost_estimate=cost,
    )(x2d, weight_p, bias_p)
    return out2d


# ----------------------------------------------------------------------------
# Module-level forward (mirrors _MultiInstanceModel.forward).
# ----------------------------------------------------------------------------
def multi_instance_forward(input_data, weight_p, bias_p, d_out, *, p_num=2,
                           tile_m=1024, return_stacked=False):
    """Pallas equivalent of _MultiInstanceModel.forward.

    input_data: list of batches, each (N, D_in), or a pre-stacked (L, N, D_in)
                array (the fast path — avoids the jnp.stack HBM copy).
    weight_p/bias_p: padded params from prepare_inner_model (padded once).
    d_out:      original (unpadded) output feature size.
    p_num:      kept for API parity; dispatch order is preserved by construction.
    returns:    list of per-batch outputs in original order, or the stacked
                (L, N, d_out) array if return_stacked=True (fast path).
    """
    del p_num  # TODO(synk): worker-pool round-robin has no Pallas equivalent.
    if isinstance(input_data, (list, tuple)):
        stacked = jnp.stack(list(input_data), axis=0)          # (L, N, D_in)
    else:
        stacked = jnp.asarray(input_data)
        if stacked.ndim != 3:
            raise ValueError(
                "The input should be a DataLoader or a list of input batchs")
    L, N, D_in = stacked.shape

    # Fold the batch axis into the matmul M dimension: one row-tiled matmul.
    out2d = _fused_linear_relu_2d(stacked.reshape(L * N, D_in),
                                  weight_p, bias_p, tile_m=tile_m)
    out = out2d[:, :d_out].reshape(L, N, d_out)
    if return_stacked:
        return out
    # List API (mirrors the recv_queues[idx % p_num].get() loop) — slow path.
    return [out[i] for i in range(L)]


if __name__ == "__main__":
    key = jax.random.PRNGKey(0)
    k_w, k_b, k_x = jax.random.split(key, 3)

    # Synthetic inner-model parameters (deterministic, small shapes).
    N, D_in, D_out = 8, 32, 32
    num_batches, p_num = 4, 2
    weight = jax.random.normal(k_w, (D_in, D_out), dtype=jnp.float32) * 0.1
    bias = jax.random.normal(k_b, (1, D_out), dtype=jnp.float32) * 0.1

    # One-time setup (module init): pad params off the hot path.
    weight_p, bias_p, _, d_out = prepare_inner_model(weight, bias)

    # A "DataLoader"-like list of input batches.
    xs = jax.random.normal(k_x, (num_batches, N, D_in), dtype=jnp.float32)
    input_data = [xs[i] for i in range(num_batches)]

    outputs = multi_instance_forward(input_data, weight_p, bias_p, d_out,
                                     p_num=p_num)
    outputs = [jax.block_until_ready(o) for o in outputs]

    # Reference check against plain JAX per-batch inner model.
    for i, x in enumerate(input_data):
        ref = jnp.maximum(x @ weight + bias, 0.0)
        assert jnp.allclose(outputs[i], ref, atol=1e-5), f"mismatch at batch {i}"
    assert len(outputs) == len(input_data)

    print("KERNEL_OK")
</pallas_src>

<mosaic_0001>
module attributes {stable_mosaic.version = 11 : i64} {
  func.func @_linear_relu_kernel(%arg0: i32, %arg1: i32, %arg2: i32, %arg3: memref<32x32xf32, #tpu.memory_space<vmem>>, %arg4: memref<32x128xf32, #tpu.memory_space<vmem>>, %arg5: memref<1x128xf32, #tpu.memory_space<vmem>>, %arg6: memref<32x128xf32, #tpu.memory_space<vmem>>) attributes {dimension_semantics = [#tpu.dimension_semantics<parallel>, #tpu.dimension_semantics<parallel>, #tpu.dimension_semantics<arbitrary>], iteration_bounds = array<i64: 1, 1, 1>, scalar_prefetch = 0 : i64, scratch_operands = 0 : i64, tpu.core_type = #tpu.core_type<tc>, window_params = [{transform_indices = @transform_0, window_bounds = array<i64: 32, 32>}, {pipeline_mode = #tpu.pipeline_mode<synchronous>, transform_indices = @transform_1, window_bounds = array<i64: 32, 128>}, {pipeline_mode = #tpu.pipeline_mode<synchronous>, transform_indices = @transform_2, window_bounds = array<i64: 1, 128>}, {transform_indices = @transform_3, window_bounds = array<i64: 32, 128>}]} {
    %c0 = arith.constant 0 : index
    %c0_0 = arith.constant 0 : index
    %0 = vector.load %arg3[%c0, %c0_0] : memref<32x32xf32, #tpu.memory_space<vmem>>, vector<32x32xf32>
    %c0_1 = arith.constant 0 : index
    %c0_2 = arith.constant 0 : index
    %1 = vector.load %arg4[%c0_1, %c0_2] : memref<32x128xf32, #tpu.memory_space<vmem>>, vector<32x128xf32>
    %cst = arith.constant dense<0.000000e+00> : vector<32x128xf32>
    %2 = tpu.matmul %0, %1, %cst {dimension_numbers = #tpu.dot_dimension_numbers<[1], [0], [0], [1], [0, 0, 1, 1], [], []>} : vector<32x32xf32>, vector<32x128xf32>, vector<32x128xf32> -> vector<32x128xf32>
    %c0_3 = arith.constant 0 : index
    %c0_4 = arith.constant 0 : index
    %3 = vector.load %arg5[%c0_3, %c0_4] : memref<1x128xf32, #tpu.memory_space<vmem>>, vector<1x128xf32>
    %4 = vector.broadcast %3 : vector<1x128xf32> to vector<32x128xf32>
    %5 = arith.addf %2, %4 : vector<32x128xf32>
    %cst_5 = arith.constant 0.000000e+00 : f32
    %6 = vector.broadcast %cst_5 : f32 to vector<32x128xf32>
    %7 = arith.maximumf %5, %6 : vector<32x128xf32>
    %c0_6 = arith.constant 0 : index
    %c0_7 = arith.constant 0 : index
    %8 = vector.load %arg6[%c0_6, %c0_7] : memref<32x128xf32, #tpu.memory_space<vmem>>, vector<32x128xf32>
    tpu.vector_store %arg6[%c0_6, %c0_7], %7 {strides = array<i32>} : memref<32x128xf32, #tpu.memory_space<vmem>>, vector<32x128xf32>,
    return
  }
  func.func @transform_0(%arg0: i32, %arg1: i32, %arg2: i32) -> (i32, i32) {
    %c0_i32 = arith.constant 0 : i32
    return %arg0, %arg2 : i32, i32
  }
  func.func @transform_1(%arg0: i32, %arg1: i32, %arg2: i32) -> (i32, i32) {
    %c0_i32 = arith.constant 0 : i32
    return %arg2, %arg1 : i32, i32
  }
  func.func @transform_2(%arg0: i32, %arg1: i32, %arg2: i32) -> (i32, i32) {
    %c0_i32 = arith.constant 0 : i32
    %c0_i32_0 = arith.constant 0 : i32
    return %c0_i32, %arg1 : i32, i32
  }
  func.func @transform_3(%arg0: i32, %arg1: i32, %arg2: i32) -> (i32, i32) {
    %c0_i32 = arith.constant 0 : i32
    return %arg0, %arg1 : i32, i32
  }
}

</mosaic_0001>

<bundles_post_ra>
// kernel: tpu_custom_call.1
= control target key start
LH: loop header
LB: loop body
LE: loop exit
PB: predicated region body
PF: predicated region fallthrough
CT: control target
= control target key end

     0   :  { %8 = vsyncpa [#allocation3], 0  ;;  %s375_s0 = inlined_call_operand.hbm [shape: f32[32,32], index: 0, kind: input, shape index: {}]   ;;  %s376_s1 = inlined_call_operand.hbm [shape: f32[32,128], index: 1, kind: input, shape index: {}]   ;;  %s377_s2 = inlined_call_operand.vmem [shape: f32[1,128], index: 2, kind: input, shape index: {}]   ;;  %s378_s3 = inlined_call_operand.hbm [shape: f32[32,128], index: 3, kind: output, shape index: {}]  }
   0x1   :  { %9 = vsyncpa [#allocation6], 0 }
   0x2   :  { %10 = vsyncpa [#allocation4], 0  ;;  %s298_s12 = smov [#allocation2]   ;;  %s226_s16 = scalar_lea.hbm %s375_s0, 512 }
   0x3   :  { %s16_s13 = sshll.u32 %s298_s12, 4  ;;  %p227_p0 = scmp.ne.s32.totalorder %s375_s0, %s226_s16  ;;  %s17_s13 = int_to_ptr.vmem [resolvable:$true] %s16_s13 }
   0x4   :  { %p230_p1 = scmp.lt.u32.totalorder %s226_s16, %s375_s0 }
   0x6   :  { %p232_p2 = pnand %p230_p1, %p227_p0 }
   0x8   :  { %235 = shalt.err (!%p232_p2)
}
   0x9   :  { %s236_s21 = scalar_lea.vmem %s17_s13, 512  ;;  %p241_p4 = scmp.lt.s32.totalorder %s17_s13, %s17_s13 }
   0xa   :  { %p237_p3 = scmp.ne.s32.totalorder %s17_s13, %s236_s21  ;;  %p242_p5 = scmp.lt.s32.totalorder %s236_s21, %s236_s21 }
   0xc   :  { %p243_p6 = por %p242_p5, %p241_p4 }
   0xe   :  { %p244_p7 = pnand %p243_p6, %p237_p3 }
  0x10   :  { %247 = shalt.err (!%p244_p7)
}
  0x11   :  { %s299_s22 = smov 128   ;;  %s300_s23 = smov 8  }
  0x12   :  { %22 = dma.hbm_to_vmem [thread:$0]  %s375_s0, 512, %s17_s13, [#allocation3], %s299_s22, %s299_s22, %s300_s23  }
  0x13   :  { %s301_s26 = smov [#allocation5]   ;;  %s248_s30 = scalar_lea.hbm %s376_s1, 512 }
  0x14   :  { %s28_s27 = sshll.u32 %s301_s26, 4  ;;  %p249_p8 = scmp.ne.s32.totalorder %s376_s1, %s248_s30  ;;  %s29_s27 = int_to_ptr.vmem [resolvable:$true] %s28_s27 }
  0x15   :  { %p252_p9 = scmp.lt.u32.totalorder %s248_s30, %s376_s1 }
  0x17   :  { %p254_p10 = pnand %p252_p9, %p249_p8 }
  0x19   :  { %257 = shalt.err (!%p254_p10)
}
  0x1a   :  { %s258_s8 = scalar_lea.vmem %s29_s27, 512  ;;  %p263_p12 = scmp.lt.s32.totalorder %s29_s27, %s29_s27 }
  0x1b   :  { %p259_p11 = scmp.ne.s32.totalorder %s29_s27, %s258_s8  ;;  %p264_p13 = scmp.lt.s32.totalorder %s258_s8, %s258_s8 }
  0x1d   :  { %p265_p0 = por %p264_p13, %p263_p12 }
  0x1f   :  { %p266_p1 = pnand %p265_p0, %p259_p11 }
  0x21   :  { %269 = shalt.err (!%p266_p1)
}
  0x22   :  { %34 = dma.hbm_to_vmem [thread:$0]  %s376_s1, 512, %s29_s27, [#allocation6], %s299_s22, %s299_s22, %s300_s23  }
  0x23   :  { %292 = dma.done.wait [#allocation3], 512  }
  0x24   :  { %293 = vsyncadd [#allocation3], 4294966784 }
  0x25   :  { %294 = dma.done.wait [#allocation6], 512  }
  0x26   :  { %295 = vsyncadd [#allocation6], 4294966784  ;;  %vm58_vm0 = vcmask 261120   ;;  %v47_v0 = vld [vmem:[#allocation5] sm:$0xff]  ;;  %v48_v1 = vld [vmem:[#allocation5 + $0x8] sm:$0xff]  ;;  %s302_s11 = smov [#allocation7]  }
  0x27   :  { %v49_v2 = vld [vmem:[#allocation5 + $0x10] sm:$0xff]  ;;  %v209_v3 = vpack.c.bf16 %v48_v1, %v47_v0  ;;  %v50_v4 = vld [vmem:[#allocation5 + $0x18] sm:$0xff]  ;;  %v43_v5 = vld [vmem:[#allocation2] sm:$0xff]  ;;  %s169_s12 = sshll.u32 %s302_s11, 4  ;;  %s170_s12 = int_to_ptr.vmem [resolvable:$true] %s169_s12 }
  0x28   :  { %v45_v6 = vld [vmem:[#allocation2 + $0x10] sm:$0xff]  ;;  %v213_v7 = vpack.c.bf16 %v50_v4, %v49_v2  ;;  %203 = vmatprep.mubr.msk.f32.mxu0 %vm58_vm0, %v43_v5  ;;  %v44_v8 = vld [vmem:[#allocation2 + $0x8] sm:$0xff]  ;;  %v46_v9 = vld [vmem:[#allocation2 + $0x18] sm:$0xff]  ;;  %p275_p3 = scmp.lt.s32.totalorder %s170_s12, %s170_s12 }
  0x29   :  { %206 = vmatprep.mubr.msk.f32.mxu1 %vm58_vm0, %v45_v6  ;;  %210 = vmatprep.subr.bf16.mxu0 %v209_v3  ;;  %v182_v10 = vld [vmem:[%s377_s2] ss:$0 sm:$0xff]  ;;  %s270_s2 = scalar_lea.vmem %s170_s12, 512 }
  0x2a   :  { %217 = vmatprep.subr.bf16.mxu1 %v209_v3  ;;  %212 = vmatpush3.bf16.msra.mxu0 %v209_v3  ;;  %p271_p2 = scmp.ne.s32.totalorder %s170_s12, %s270_s2  ;;  %p276_p4 = scmp.lt.s32.totalorder %s270_s2, %s270_s2 }
  0x2b   :  { %219 = vmatpush3.bf16.msra.mxu1 %v209_v3  ;;  %214 = vmatprep.subr.bf16.mxu0 %v213_v7 }
  0x2c   :  { %218 = vmatprep.subr.bf16.mxu1 %v213_v7  ;;  %p277_p5 = por %p276_p4, %p275_p3 }
  0x2e   :  { %216 = vmatpush3.bf16.msra.mxu0 %v213_v7  ;;  %p278_p6 = pnand %p277_p5, %p271_p2 }
  0x2f   :  { %220 = vmatpush3.bf16.msra.mxu1 %v213_v7 }
  0x31   :  { %204 = vmatmul.mubr.msk.f32.vlgmr.msra.gmra.mrb[0].mxu0 %vm58_vm0, %v44_v8 }
  0x32   :  { %207 = vmatmul.mubr.msk.f32.vlgmr.msra.gmra.mrb[0].mxu1 %vm58_vm0, %v46_v9 }
 0x104   :  { %v205_v11 = vpop.f32.mrb[0].mxu0 }
 0x105   :  { %v208_v12 = vpop.f32.mrb[0].mxu1  ;;  %v143_v13 = vadd.f32 %v205_v11, %v182_v10  ;;  %v137_v15 = vpop.f32.mrb[1].mxu0 }
 0x106   :  { %v153_v14 = vadd.f32 %v208_v12, %v182_v10  ;;  %v147_v16 = vpop.f32.mrb[1].mxu1  ;;  %v138_v17 = vadd.f32 %v182_v10, %v137_v15 }
 0x107   :  { %v148_v18 = vadd.f32 %v182_v10, %v147_v16  ;;  %v157_v19 = vmax.f32 %v143_v13, 0.0 }
 0x108   :  { %v159_v20 = vmax.f32 %v153_v14, 0.0  ;;  %v156_v21 = vmax.f32 %v138_v17, 0.0 }
 0x109   :  { %v158_v22 = vmax.f32 %v148_v18, 0.0  ;;  %161 = vst [vmem:[#allocation7 + $0x8] sm:$0xff] %v157_v19 }
 0x10a   :  { %163 = vst [vmem:[#allocation7 + $0x18] sm:$0xff] %v159_v20  ;;  %160 = vst [vmem:[#allocation7] sm:$0xff] %v156_v21 }
 0x10b   :  { %162 = vst [vmem:[#allocation7 + $0x10] sm:$0xff] %v158_v22 }
 0x10c   :  { %281 = shalt.err (!%p278_p6)
}
 0x10d   :  { %s282_s15 = scalar_lea.hbm %s378_s3, 512 }
 0x10e   :  { %p283_p7 = scmp.ne.s32.totalorder %s378_s3, %s282_s15  ;;  %p286_p8 = scmp.lt.u32.totalorder %s282_s15, %s378_s3 }
 0x110   :  { %p288_p9 = pnand %p286_p8, %p283_p7 }
 0x112   :  { %291 = shalt.err (!%p288_p9)
}
 0x113   :  { %175 = dma.vmem_to_hbm [thread:$0]  %s170_s12, 512, %s378_s3, [#allocation4], %s299_s22, %s299_s22, %s300_s23  }
 0x114   :  { %296 = dma.done.wait [#allocation4], 512  }
 0x115   :  { %297 = vsyncadd [#allocation4], 4294966784 }
 0x116   :  { %179 = vsyncpa [#allocation3], 1 }
 0x117   :  { %180 = vsyncpa [#allocation6], 1 }
 0x118   :  { %181 = vsyncpa [#allocation4], 1 }

</bundles_post_ra>
